<compile_context>
chip_gen: v5e
topology: v5e:2x2
jax: 0.10.0
libtpu: 0.0.40
codegen_flags: <defaults>
</compile_context>

<pallas_src>
import jax
import jax.numpy as jnp
from jax.experimental import pallas as pl
from jax.experimental.pallas import tpu as pltpu

LANE = 128
EPS = 1e-4


def _make_bifpn_kernel(L: int):
    def kernel(w_ref, *refs):
        # w_ref: (L,) normalized fusion weights in SMEM (scalar prefetch).
        # refs:  L input tiles of shape (row_tile, LANE), then the output tile.
        x_refs = refs[:L]
        o_ref = refs[L]
        acc = w_ref[0] * x_refs[0][...].astype(jnp.float32)
        for i in range(1, L):                              # static unroll over L
            acc = acc + w_ref[i] * x_refs[i][...].astype(jnp.float32)
        o_ref[...] = acc.astype(o_ref.dtype)

    return kernel


def _default_row_tile() -> int:
    # v7x HBM (~3.2 TB/s) makes the ~0.35 us per-grid-step overhead relatively
    # larger, so use bigger tiles there. 2048 rows (1 MiB f32 blocks) is already
    # on the roofline plateau for v5e/v6e.
    try:
        kind = jax.devices()[0].device_kind.lower()
    except Exception:
        kind = ""
    return 4096 if "7" in kind else 2048


def bi_fpn(xs, weight, eps: float = EPS, row_tile=None):
    """xs: list of L arrays with identical shape (NCHW, like the PyTorch module)."""
    L = len(xs)
    fmap_shape = xs[0].shape
    in_dtype = xs[0].dtype
    total = 1
    for d in fmap_shape:
        total *= d

    # --- normalized fusion weights, computed once in the wrapper ---
    w = weight.astype(jnp.float32)
    wn = w / (jnp.sum(w * jax.nn.sigmoid(w)) + eps)        # (L,) -> SMEM via prefetch

    out_dtype = jnp.promote_types(in_dtype, jnp.float32)   # torch: f32 weight * x[i]

    flats = [jnp.reshape(a, (-1,)) for a in xs]            # free for contiguous arrays
    main = (total // LANE) * LANE                          # lane-aligned bulk
    tail = total - main                                    # < 128 leftover elements

    # --- ragged tail (<128 elems): tiny XLA weighted sum; avoids jnp.pad copies ---
    tail_out = None
    if tail:
        t_acc = wn[0] * flats[0][main:].astype(jnp.float32)
        for i in range(1, L):
            t_acc = t_acc + wn[i] * flats[i][main:].astype(jnp.float32)
        tail_out = t_acc.astype(out_dtype)

    if main == 0:
        return tail_out.reshape(fmap_shape)

    # --- main bulk: lane-dense (R, 128) slabs (free reshape when tail == 0) ---
    R = main // LANE
    slabs = [jnp.reshape(f[:main] if tail else f, (R, LANE)) for f in flats]

    # --- tile sizing ---
    # Sublane granularity: 8 rows for 32-bit, 16 for 16-bit, 32 for 8-bit dtypes.
    sub = {4: 8, 2: 16, 1: 32}.get(jnp.dtype(in_dtype).itemsize, 8)
    if row_tile is None:
        row_tile = _default_row_tile()
    row_tile = max(sub, (row_tile // sub) * sub)
    row_tile = min(row_tile, -(-R // sub) * sub)           # never bigger than the slab
    # Only ask for ~3 grid steps of pipeline depth; never shrink below 512 rows
    # (measured: 512 rows ~85% / 1024+ ~86% of HBM roofline — stay on the plateau).
    while row_tile > 512 and pl.cdiv(R, row_tile) < 3:
        row_tile //= 2
    row_tile = max(sub, (row_tile // sub) * sub)

    grid = (pl.cdiv(R, row_tile),)

    in_bytes = jnp.dtype(in_dtype).itemsize
    out_bytes = jnp.dtype(out_dtype).itemsize
    # Double-buffered footprint of all streams; request that plus headroom,
    # not the whole physical VMEM.
    footprint = 2 * row_tile * LANE * (L * in_bytes + out_bytes)
    vmem_limit = int(max(16 << 20, min(footprint + (4 << 20), 48 << 20)))

    in_specs = [
        pl.BlockSpec((row_tile, LANE), lambda r, wref: (r, 0)) for _ in range(L)
    ]

    main_out = pl.pallas_call(
        _make_bifpn_kernel(L),
        out_shape=jax.ShapeDtypeStruct((R, LANE), out_dtype),
        grid_spec=pltpu.PrefetchScalarGridSpec(
            num_scalar_prefetch=1,
            grid=grid,
            in_specs=in_specs,
            out_specs=pl.BlockSpec((row_tile, LANE), lambda r, wref: (r, 0)),
        ),
        compiler_params=pltpu.CompilerParams(
            dimension_semantics=("parallel",),
            vmem_limit_bytes=vmem_limit,
        ),
        cost_estimate=pl.CostEstimate(
            flops=2 * L * main,
            transcendentals=0,
            bytes_accessed=main * (L * in_bytes + out_bytes),
        ),
    )(wn, *slabs)

    if tail:
        # TODO(synk): ragged (non-multiple-of-128) sizes pay one slice/concat copy;
        # NCHW feature maps are virtually always lane-aligned so the hot path is copy-free.
        return jnp.concatenate([main_out.reshape(-1), tail_out]).reshape(fmap_shape)
    return main_out.reshape(fmap_shape)


def bi_fpn_reference(xs, weight, eps: float = EPS):
    w = weight.astype(jnp.float32)
    wn = w / (jnp.sum(w * jax.nn.sigmoid(w)) + eps)
    out = wn[0] * xs[0]
    for i in range(1, len(xs)):
        out = out + wn[i] * xs[i]
    return out


if __name__ == "__main__":
    L = 3                                   # Bi_FPN(length=3)
    # Deterministic parameter init, matching nn.Parameter(torch.ones(length)).
    weight = jnp.ones((L,), dtype=jnp.float32)

    # 1) lane-aligned NCHW feature maps -> zero-copy fast path
    N, C, H, W = 2, 4, 16, 16
    keys = jax.random.split(jax.random.PRNGKey(0), L)
    xs = [jax.random.normal(k, (N, C, H, W), dtype=jnp.float32) for k in keys]
    out = jax.block_until_ready(bi_fpn(xs, weight))
    ref = bi_fpn_reference(xs, weight)
    assert out.shape == (N, C, H, W)
    assert out.dtype == ref.dtype
    assert jnp.allclose(out, ref, atol=1e-5, rtol=1e-5), "mismatch vs reference (aligned)"

    # 2) ragged total (600 elems, not a multiple of 128) -> kernel bulk + XLA tail
    keys = jax.random.split(jax.random.PRNGKey(1), L)
    xs2 = [jax.random.normal(k, (2, 3, 10, 10), dtype=jnp.float32) for k in keys]
    out2 = jax.block_until_ready(bi_fpn(xs2, weight))
    ref2 = bi_fpn_reference(xs2, weight)
    assert jnp.allclose(out2, ref2, atol=1e-5, rtol=1e-5), "mismatch vs reference (ragged)"

    # 3) tiny map (< 128 elements) -> pure-XLA tail path
    keys = jax.random.split(jax.random.PRNGKey(2), L)
    xs3 = [jax.random.normal(k, (1, 3, 5, 7), dtype=jnp.float32) for k in keys]
    out3 = jax.block_until_ready(bi_fpn(xs3, weight))
    ref3 = bi_fpn_reference(xs3, weight)
    assert jnp.allclose(out3, ref3, atol=1e-5, rtol=1e-5), "mismatch vs reference (tiny)"

    print("KERNEL_OK")
</pallas_src>

<mosaic_0001>
module attributes {stable_mosaic.version = 11 : i64} {
  func.func @kernel(%arg0: i32, %arg1: memref<3xf32, #tpu.memory_space<smem>>, %arg2: memref<16x128xf32, #tpu.memory_space<vmem>>, %arg3: memref<16x128xf32, #tpu.memory_space<vmem>>, %arg4: memref<16x128xf32, #tpu.memory_space<vmem>>, %arg5: memref<16x128xf32, #tpu.memory_space<vmem>>) attributes {dimension_semantics = [#tpu.dimension_semantics<parallel>], iteration_bounds = array<i64: 1>, scalar_prefetch = 1 : i64, scratch_operands = 0 : i64, tpu.core_type = #tpu.core_type<tc>, window_params = [{transform_indices = @transform_0, window_bounds = array<i64: 16, 128>}, {transform_indices = @transform_1, window_bounds = array<i64: 16, 128>}, {transform_indices = @transform_2, window_bounds = array<i64: 16, 128>}, {transform_indices = @transform_3, window_bounds = array<i64: 16, 128>}]} {
    %c0 = arith.constant 0 : index
    %0 = memref.load %arg1[%c0] : memref<3xf32, #tpu.memory_space<smem>>
    %c0_0 = arith.constant 0 : index
    %c0_1 = arith.constant 0 : index
    %1 = vector.load %arg2[%c0_0, %c0_1] : memref<16x128xf32, #tpu.memory_space<vmem>>, vector<16x128xf32>
    %2 = vector.broadcast %0 : f32 to vector<16x128xf32>
    %3 = arith.mulf %2, %1 : vector<16x128xf32>
    %c1 = arith.constant 1 : index
    %4 = memref.load %arg1[%c1] : memref<3xf32, #tpu.memory_space<smem>>
    %c0_2 = arith.constant 0 : index
    %c0_3 = arith.constant 0 : index
    %5 = vector.load %arg3[%c0_2, %c0_3] : memref<16x128xf32, #tpu.memory_space<vmem>>, vector<16x128xf32>
    %6 = vector.broadcast %4 : f32 to vector<16x128xf32>
    %7 = arith.mulf %6, %5 : vector<16x128xf32>
    %8 = arith.addf %3, %7 : vector<16x128xf32>
    %c2 = arith.constant 2 : index
    %9 = memref.load %arg1[%c2] : memref<3xf32, #tpu.memory_space<smem>>
    %c0_4 = arith.constant 0 : index
    %c0_5 = arith.constant 0 : index
    %10 = vector.load %arg4[%c0_4, %c0_5] : memref<16x128xf32, #tpu.memory_space<vmem>>, vector<16x128xf32>
    %11 = vector.broadcast %9 : f32 to vector<16x128xf32>
    %12 = arith.mulf %11, %10 : vector<16x128xf32>
    %13 = arith.addf %8, %12 : vector<16x128xf32>
    %c0_6 = arith.constant 0 : index
    %c0_7 = arith.constant 0 : index
    %14 = vector.load %arg5[%c0_6, %c0_7] : memref<16x128xf32, #tpu.memory_space<vmem>>, vector<16x128xf32>
    tpu.vector_store %arg5[%c0_6, %c0_7], %13 {strides = array<i32>} : memref<16x128xf32, #tpu.memory_space<vmem>>, vector<16x128xf32>,
    return
  }
  func.func @transform_0(%arg0: i32, %arg1: memref<3xf32, #tpu.memory_space<smem>>) -> (i32, i32) {
    %c0_i32 = arith.constant 0 : i32
    %c0_i32_0 = arith.constant 0 : i32
    return %arg0, %c0_i32 : i32, i32
  }
  func.func @transform_1(%arg0: i32, %arg1: memref<3xf32, #tpu.memory_space<smem>>) -> (i32, i32) {
    %c0_i32 = arith.constant 0 : i32
    %c0_i32_0 = arith.constant 0 : i32
    return %arg0, %c0_i32 : i32, i32
  }
  func.func @transform_2(%arg0: i32, %arg1: memref<3xf32, #tpu.memory_space<smem>>) -> (i32, i32) {
    %c0_i32 = arith.constant 0 : i32
    %c0_i32_0 = arith.constant 0 : i32
    return %arg0, %c0_i32 : i32, i32
  }
  func.func @transform_3(%arg0: i32, %arg1: memref<3xf32, #tpu.memory_space<smem>>) -> (i32, i32) {
    %c0_i32 = arith.constant 0 : i32
    %c0_i32_0 = arith.constant 0 : i32
    return %arg0, %c0_i32 : i32, i32
  }
}

</mosaic_0001>

<bundles_post_ra>
// kernel: tpu_custom_call.1
= control target key start
LH: loop header
LB: loop body
LE: loop exit
PB: predicated region body
PF: predicated region fallthrough
CT: control target
= control target key end

     0   :  { %s240_s18 = smov [#allocation3]   ;;  %s299_s0 = inlined_call_operand.hbm [shape: f32[3], index: 0, kind: input, shape index: {}]   ;;  %s300_s1 = inlined_call_operand.hbm [shape: f32[16,128], index: 1, kind: input, shape index: {}]   ;;  %s301_s2 = inlined_call_operand.hbm [shape: f32[16,128], index: 2, kind: input, shape index: {}]   ;;  %s302_s3 = inlined_call_operand.hbm [shape: f32[16,128], index: 3, kind: input, shape index: {}]   ;;  %s303_s4 = inlined_call_operand.hbm [shape: f32[16,128], index: 4, kind: output, shape index: {}]  }
   0x1   :  { %s10_s17 = sshll.u32 %s299_s0, 4  ;;  %s11_s17 = int_to_ptr.hbm [resolvable:$true] %s10_s17 }
   0x2   :  { %13 = dma.hbm_to_smem %s11_s17, 16, %s240_s18, [#allocation2] }
   0x3   :  { %232 = dma.done.wait [#allocation2], 16 }
   0x4   :  { %233 = vsyncadd [#allocation2], 4294967280 }
   0x5   :  { %16 = sfence }
   0x6   :  { %17 = vsyncpa [#allocation5], 0 }
   0x7   :  { %18 = vsyncpa [#allocation8], 0 }
   0x8   :  { %19 = vsyncpa [#allocation6], 0  ;;  %s37_s21 = sshll.u32 %s301_s2, 4  ;;  %s241_s22 = smov [#allocation7]   ;;  %s38_s21 = int_to_ptr.hbm [resolvable:$true] %s37_s21 }
   0x9   :  { %s39_s23 = sshll.u32 %s241_s22, 4  ;;  %s24_s0 = sshll.u32 %s300_s1, 4  ;;  %s40_s23 = int_to_ptr.vmem [resolvable:$true] %s39_s23  ;;  %s25_s0 = int_to_ptr.hbm [resolvable:$true] %s24_s0 }
   0xa   :  { %s242_s26 = smov 128   ;;  %s243_s27 = smov 8  }
   0xb   :  { %45 = dma.hbm_to_vmem [thread:$0]  %s38_s21, 256, %s40_s23, [#allocation8], %s242_s26, %s242_s26, %s243_s27  }
   0xc   :  { %s244_s28 = smov [#allocation4]   ;;  %s50_s2 = sshll.u32 %s302_s3, 4  ;;  %s51_s2 = int_to_ptr.hbm [resolvable:$true] %s50_s2 }
   0xd   :  { %s26_s29 = sshll.u32 %s244_s28, 4  ;;  %s245_s1 = smov [#allocation9]   ;;  %s27_s29 = int_to_ptr.vmem [resolvable:$true] %s26_s29 }
   0xe   :  { %32 = dma.hbm_to_vmem [thread:$0]  %s25_s0, 256, %s27_s29, [#allocation5], %s242_s26, %s242_s26, %s243_s27  }
   0xf   :  { %s52_s6 = sshll.u32 %s245_s1, 4  ;;  %s53_s6 = int_to_ptr.vmem [resolvable:$true] %s52_s6 }
  0x10   :  { %58 = dma.hbm_to_vmem [thread:$0]  %s51_s2, 256, %s53_s6, [#allocation8], %s242_s26, %s242_s26, %s243_s27  }
  0x11   :  { %234 = dma.done.wait [#allocation5], 256  }
  0x12   :  { %235 = vsyncadd [#allocation5], 4294967040 }
  0x13   :  { %236 = dma.done.wait [#allocation8], 512  }
  0x14   :  { %237 = vsyncadd [#allocation8], 4294966784  ;;  %s71_s7 = sld [smem:[#allocation3]]  ;;  %v72_v0 = vld [vmem:[#allocation4] sm:$0xff]  ;;  %v78_v2 = vld [vmem:[#allocation7] sm:$0xff]  ;;  %s246_s9 = smov [#allocation10]  }
  0x15   :  { %s115_s8 = sld [smem:[#allocation3 + $0x1]]  ;;  %v86_v3 = vld [vmem:[#allocation9] sm:$0xff]  ;;  %v73_v6 = vld [vmem:[#allocation4 + $0x8] sm:$0xff]  ;;  %v79_v7 = vld [vmem:[#allocation7 + $0x8] sm:$0xff]  ;;  %s99_s10 = sshll.u32 %s246_s9, 4  ;;  %s100_s10 = int_to_ptr.vmem [resolvable:$true] %s99_s10 }
  0x16   :  { %s116_s3 = sld [smem:[#allocation3 + $0x2]]  ;;  %v87_v8 = vld [vmem:[#allocation9 + $0x8] sm:$0xff]  ;;  %s101_s13 = sshll.u32 %s303_s4, 4  ;;  %s102_s13 = int_to_ptr.hbm [resolvable:$true] %s101_s13 }
  0x1a   :  { %v74_v1 = vstv %s71_s7 }
  0x1b   :  { %v75_v4 = vmul.f32 %v74_v1, %v72_v0  ;;  %v80_v5 = vstv %s115_s8  ;;  %v76_v11 = vmul.f32 %v74_v1, %v73_v6 }
  0x1c   :  { %v81_v9 = vmul.f32 %v80_v5, %v78_v2  ;;  %v88_v10 = vstv %s116_s3  ;;  %v82_v12 = vmul.f32 %v80_v5, %v79_v7 }
  0x1d   :  { %v89_v13 = vmul.f32 %v88_v10, %v86_v3  ;;  %v90_v14 = vmul.f32 %v88_v10, %v87_v8 }
  0x1e   :  { %v83_v15 = vadd.f32 %v81_v9, %v75_v4  ;;  %v84_v16 = vadd.f32 %v82_v12, %v76_v11 }
  0x20   :  { %v91_v17 = vadd.f32 %v89_v13, %v83_v15  ;;  %v92_v18 = vadd.f32 %v90_v14, %v84_v16 }
  0x22   :  { %93 = vst [vmem:[#allocation10] sm:$0xff] %v91_v17 }
  0x23   :  { %94 = vst [vmem:[#allocation10 + $0x8] sm:$0xff] %v92_v18 }
  0x24   :  { %107 = dma.vmem_to_hbm [thread:$0]  %s100_s10, 256, %s102_s13, [#allocation6], %s242_s26, %s242_s26, %s243_s27  }
  0x25   :  { %238 = dma.done.wait [#allocation6], 256  }
  0x26   :  { %239 = vsyncadd [#allocation6], 4294967040 }
  0x27   :  { %112 = vsyncpa [#allocation5], 1 }
  0x28   :  { %113 = vsyncpa [#allocation8], 1 }
  0x29   :  { %114 = vsyncpa [#allocation6], 1 }

</bundles_post_ra>
